<compile_context>
chip_gen: v7x
topology: tpu7x:2x2x1
jax: 0.10.0
libtpu: 0.0.40
codegen_flags: <defaults>
</compile_context>

<pallas_src>
import functools
import math
from typing import NamedTuple, Tuple

import jax
import jax.numpy as jnp
from jax.experimental import pallas as pl
from jax.experimental.pallas import tpu as pltpu


def _round_up(x, m):
    return ((x + m - 1) // m) * m


def _make_mlp_kernel(num_layers, negative_slope=0.01):
    """Fused kernel: all layers computed on one VMEM-resident batch tile."""

    def kernel(*refs):
        # refs = (x_ref, w0_ref, b0_ref, w1_ref, b1_ref, ..., out_ref)
        x_ref = refs[0]
        out_ref = refs[-1]
        h = x_ref[...]  # bf16 (tile_b, D_in_padded)
        for i in range(num_layers):
            w_ref = refs[1 + 2 * i]
            b_ref = refs[2 + 2 * i]
            # MXU consumes bf16 operands, accumulates f32.
            acc = jnp.dot(h, w_ref[...], preferred_element_type=jnp.float32)
            acc = acc + b_ref[...]                        # f32 elementwise (v5e-safe)
            acc = jnp.maximum(acc, negative_slope * acc)  # LeakyReLU (single VPU max)
            # Dropout: identity in eval mode.
            if i + 1 < num_layers:
                h = acc.astype(jnp.bfloat16)              # next MXU input
            else:
                out_ref[...] = acc

    return kernel


class PreparedMLP(NamedTuple):
    weights: Tuple[jax.Array, ...]   # padded bf16, (p_in, p_out)
    biases: Tuple[jax.Array, ...]    # padded f32,  (1, p_out)
    input_size: int                  # unpadded flattened input size
    out_dim: int                     # unpadded final layer width
    padded_dims: Tuple[int, ...]     # 128-aligned feature dims, len = num_layers + 1


def prepare_params(weights, biases):
    """One-time parameter prep (hoisted out of the forward path): zero-pad every feature
    dim to a multiple of 128 (lane-dense MXU tiles, unmasked stores) and cast weights to
    bf16.  Padded weight rows/cols and bias entries are zero, so padded activation
    columns are exactly 0 through every layer."""
    dims = [weights[0].shape[0]] + [w.shape[1] for w in weights]
    pdims = [_round_up(d, 128) for d in dims]
    pw, pb = [], []
    for li, (w, b) in enumerate(zip(weights, biases)):
        d_in, d_out = w.shape
        wp = jnp.pad(w.astype(jnp.bfloat16),
                     ((0, pdims[li] - d_in), (0, pdims[li + 1] - d_out)))
        bp = jnp.pad(b.reshape(1, d_out).astype(jnp.float32),
                     ((0, 0), (0, pdims[li + 1] - d_out)))
        pw.append(wp)
        pb.append(bp)
    return PreparedMLP(tuple(pw), tuple(pb), dims[0], dims[-1], tuple(pdims))


def _choose_tile_b(batch, requested):
    if batch <= 8:
        # Single block equal to the full batch: no partial tiles, grid=(1,).
        return batch
    # Cap at ~batch/2 (rounded to the 8-row sublane granule) so there are always >= 2
    # grid steps -> the "parallel" batch axis can be sharded across v7x's 2 TensorCores.
    half = _round_up((batch + 1) // 2, 8)
    return max(8, min(requested, half))


def mlp_forward(x, params: PreparedMLP, *, tile_b=512):
    """x: any shape, flattened to (-1, input_size).  params: from prepare_params()."""
    input_size = params.input_size
    pdims = params.padded_dims
    num_layers = len(params.weights)

    x2d = x.reshape(-1, input_size)
    batch = x2d.shape[0]

    # Activation prep: bf16 cast only (halves input DMA).  Feature dim padded only if not
    # already a multiple of 128 (1024 is).  Batch dim intentionally NOT padded: the cdiv
    # grid lets Pallas mask the partial last tile; garbage in masked rows never reaches
    # valid output rows.
    xp = x2d.astype(jnp.bfloat16)
    if pdims[0] != input_size:
        xp = jnp.pad(xp, ((0, 0), (0, pdims[0] - input_size)))

    tb = _choose_tile_b(batch, tile_b)
    grid_b = (batch + tb - 1) // tb

    operands = [xp]
    in_specs = [pl.BlockSpec((tb, pdims[0]), lambda i: (i, 0))]
    for li in range(num_layers):
        operands += [params.weights[li], params.biases[li]]
        # Full-array blocks with a constant index_map -> VMEM-resident across all batch
        # tiles (no per-step re-DMA).  ~0.6 MiB bf16 total at these layer sizes.
        in_specs += [
            pl.BlockSpec((pdims[li], pdims[li + 1]), lambda i: (0, 0)),
            pl.BlockSpec((1, pdims[li + 1]), lambda i: (0, 0)),
        ]

    work_rows = grid_b * tb
    flops = 2 * work_rows * sum(pdims[i] * pdims[i + 1] for i in range(num_layers))
    bytes_accessed = (
        int(xp.size) * xp.dtype.itemsize
        + sum(int(o.size) * o.dtype.itemsize for o in operands[1:])
        + batch * pdims[-1] * 4
    )

    out = pl.pallas_call(
        _make_mlp_kernel(num_layers),
        out_shape=jax.ShapeDtypeStruct((batch, pdims[-1]), jnp.float32),
        grid=(grid_b,),
        in_specs=in_specs,
        out_specs=pl.BlockSpec((tb, pdims[-1]), lambda i: (i, 0)),
        compiler_params=pltpu.CompilerParams(dimension_semantics=("parallel",)),
        cost_estimate=pl.CostEstimate(
            flops=flops, transcendentals=0, bytes_accessed=bytes_accessed
        ),
    )(*operands)

    # Only padded feature columns need slicing off (batch was never padded).
    return out[:, : params.out_dim]


def init_params(key, input_size, layer_list):
    """Deterministic init matching MLPKernel.__init__ semantics:
    weights (dim > 1): kaiming_normal_ (fan_in, leaky_relu gain sqrt(2));
    biases: PyTorch nn.Linear default uniform(-1/sqrt(fan_in), 1/sqrt(fan_in))."""
    weights, biases = [], []
    prev = input_size
    for out_dim in layer_list:
        key, kw, kb = jax.random.split(key, 3)
        std = math.sqrt(2.0 / prev)
        w = jax.random.normal(kw, (prev, out_dim), dtype=jnp.float32) * std
        bound = 1.0 / math.sqrt(prev)
        b = jax.random.uniform(
            kb, (1, out_dim), dtype=jnp.float32, minval=-bound, maxval=bound
        )
        weights.append(w)
        biases.append(b)
        prev = out_dim
    return weights, biases


def reference_forward(x, weights, biases, *, quantize_bf16=True):
    """Pure-JAX reference. quantize_bf16 mirrors the kernel's bf16 operand quantization
    (f32 accumulation) so the comparison is tight."""
    h = x.reshape(-1, weights[0].shape[0]).astype(jnp.float32)
    for w, b in zip(weights, biases):
        if quantize_bf16:
            hq = h.astype(jnp.bfloat16).astype(jnp.float32)
            wq = w.astype(jnp.bfloat16).astype(jnp.float32)
        else:
            hq, wq = h, w
        h = hq @ wq + b
        h = jnp.where(h >= 0, h, 0.01 * h)
    return h


if __name__ == "__main__":
    key = jax.random.PRNGKey(0)

    # Module configuration (small, consistent with the forward):
    input_dimensions = (4, 16, 16)   # flattened -> 1024 features
    input_size = functools.reduce(lambda a, b: a * b, input_dimensions, 1)
    layer_list = [200, 100]          # default hyperparameters
    batch = 2

    key, kx, kp = jax.random.split(key, 3)
    x = jax.random.normal(kx, (batch,) + input_dimensions, dtype=jnp.float32)
    weights, biases = init_params(kp, input_size, layer_list)

    # One-time parameter prep (padding + bf16 cast hoisted out of the forward path).
    params = prepare_params(weights, biases)
    jax.block_until_ready(params.weights)
    jax.block_until_ready(params.biases)

    fwd = jax.jit(lambda inp: mlp_forward(inp, params))
    out = jax.block_until_ready(fwd(x))

    # Mirror the module's NaN assertion (after the feature slice) and sanity-check
    # against pure-JAX references.
    assert out.shape == (batch, layer_list[-1])
    assert not bool(jnp.isnan(out).any())
    ref_q = reference_forward(x, weights, biases, quantize_bf16=True)
    assert bool(jnp.allclose(out, ref_q, atol=1e-3, rtol=1e-3)), "mismatch vs bf16-quantized ref"
    ref_f = reference_forward(x, weights, biases, quantize_bf16=False)
    assert bool(jnp.allclose(out, ref_f, atol=5e-2, rtol=5e-2)), "mismatch vs f32 ref"

    print("KERNEL_OK")
</pallas_src>

<mosaic_0001>
module attributes {stable_mosaic.version = 11 : i64} {
  func.func @kernel(%arg0: i32, %arg1: memref<2x1024xbf16, #tpu.memory_space<vmem>>, %arg2: memref<1024x256xbf16, #tpu.memory_space<vmem>>, %arg3: memref<1x256xf32, #tpu.memory_space<vmem>>, %arg4: memref<256x128xbf16, #tpu.memory_space<vmem>>, %arg5: memref<1x128xf32, #tpu.memory_space<vmem>>, %arg6: memref<2x128xf32, #tpu.memory_space<vmem>>) attributes {dimension_semantics = [#tpu.dimension_semantics<parallel>], iteration_bounds = array<i64: 1>, scalar_prefetch = 0 : i64, scratch_operands = 0 : i64, tpu.core_type = #tpu.core_type<tc>, window_params = [{transform_indices = @transform_0, window_bounds = array<i64: 2, 1024>}, {pipeline_mode = #tpu.pipeline_mode<synchronous>, transform_indices = @transform_1, window_bounds = array<i64: 1024, 256>}, {pipeline_mode = #tpu.pipeline_mode<synchronous>, transform_indices = @transform_2, window_bounds = array<i64: 1, 256>}, {pipeline_mode = #tpu.pipeline_mode<synchronous>, transform_indices = @transform_3, window_bounds = array<i64: 256, 128>}, {pipeline_mode = #tpu.pipeline_mode<synchronous>, transform_indices = @transform_4, window_bounds = array<i64: 1, 128>}, {transform_indices = @transform_5, window_bounds = array<i64: 2, 128>}]} {
    %c0 = arith.constant 0 : index
    %c0_0 = arith.constant 0 : index
    %0 = vector.load %arg1[%c0, %c0_0] : memref<2x1024xbf16, #tpu.memory_space<vmem>>, vector<2x1024xbf16>
    %c0_1 = arith.constant 0 : index
    %c0_2 = arith.constant 0 : index
    %1 = vector.load %arg2[%c0_1, %c0_2] : memref<1024x256xbf16, #tpu.memory_space<vmem>>, vector<1024x256xbf16>
    %cst = arith.constant dense<0.000000e+00> : vector<2x256xf32>
    %2 = tpu.matmul %0, %1, %cst {dimension_numbers = #tpu.dot_dimension_numbers<[1], [0], [0], [1], [0, 0, 1, 1], [], []>} : vector<2x1024xbf16>, vector<1024x256xbf16>, vector<2x256xf32> -> vector<2x256xf32>
    %c0_3 = arith.constant 0 : index
    %c0_4 = arith.constant 0 : index
    %3 = vector.load %arg3[%c0_3, %c0_4] : memref<1x256xf32, #tpu.memory_space<vmem>>, vector<1x256xf32>
    %4 = vector.broadcast %3 : vector<1x256xf32> to vector<2x256xf32>
    %5 = arith.addf %2, %4 : vector<2x256xf32>
    %cst_5 = arith.constant 0.00999999977 : f32
    %6 = vector.broadcast %cst_5 : f32 to vector<2x256xf32>
    %7 = arith.mulf %6, %5 : vector<2x256xf32>
    %8 = arith.maximumf %5, %7 : vector<2x256xf32>
    %9 = arith.truncf %8 : vector<2x256xf32> to vector<2x256xbf16>
    %c0_6 = arith.constant 0 : index
    %c0_7 = arith.constant 0 : index
    %10 = vector.load %arg4[%c0_6, %c0_7] : memref<256x128xbf16, #tpu.memory_space<vmem>>, vector<256x128xbf16>
    %cst_8 = arith.constant dense<0.000000e+00> : vector<2x128xf32>
    %11 = tpu.matmul %9, %10, %cst_8 {dimension_numbers = #tpu.dot_dimension_numbers<[1], [0], [0], [1], [0, 0, 1, 1], [], []>} : vector<2x256xbf16>, vector<256x128xbf16>, vector<2x128xf32> -> vector<2x128xf32>
    %c0_9 = arith.constant 0 : index
    %c0_10 = arith.constant 0 : index
    %12 = vector.load %arg5[%c0_9, %c0_10] : memref<1x128xf32, #tpu.memory_space<vmem>>, vector<1x128xf32>
    %13 = vector.broadcast %12 : vector<1x128xf32> to vector<2x128xf32>
    %14 = arith.addf %11, %13 : vector<2x128xf32>
    %cst_11 = arith.constant 0.00999999977 : f32
    %15 = vector.broadcast %cst_11 : f32 to vector<2x128xf32>
    %16 = arith.mulf %15, %14 : vector<2x128xf32>
    %17 = arith.maximumf %14, %16 : vector<2x128xf32>
    %c0_12 = arith.constant 0 : index
    %c0_13 = arith.constant 0 : index
    %18 = vector.load %arg6[%c0_12, %c0_13] : memref<2x128xf32, #tpu.memory_space<vmem>>, vector<2x128xf32>
    tpu.vector_store %arg6[%c0_12, %c0_13], %17 {strides = array<i32>} : memref<2x128xf32, #tpu.memory_space<vmem>>, vector<2x128xf32>,
    return
  }
  func.func @transform_0(%arg0: i32) -> (i32, i32) {
    %c0_i32 = arith.constant 0 : i32
    %c0_i32_0 = arith.constant 0 : i32
    return %arg0, %c0_i32 : i32, i32
  }
  func.func @transform_1(%arg0: i32) -> (i32, i32) {
    %c0_i32 = arith.constant 0 : i32
    %c0_i32_0 = arith.constant 0 : i32
    %c0_i32_1 = arith.constant 0 : i32
    return %c0_i32, %c0_i32_0 : i32, i32
  }
  func.func @transform_2(%arg0: i32) -> (i32, i32) {
    %c0_i32 = arith.constant 0 : i32
    %c0_i32_0 = arith.constant 0 : i32
    %c0_i32_1 = arith.constant 0 : i32
    return %c0_i32, %c0_i32_0 : i32, i32
  }
  func.func @transform_3(%arg0: i32) -> (i32, i32) {
    %c0_i32 = arith.constant 0 : i32
    %c0_i32_0 = arith.constant 0 : i32
    %c0_i32_1 = arith.constant 0 : i32
    return %c0_i32, %c0_i32_0 : i32, i32
  }
  func.func @transform_4(%arg0: i32) -> (i32, i32) {
    %c0_i32 = arith.constant 0 : i32
    %c0_i32_0 = arith.constant 0 : i32
    %c0_i32_1 = arith.constant 0 : i32
    return %c0_i32, %c0_i32_0 : i32, i32
  }
  func.func @transform_5(%arg0: i32) -> (i32, i32) {
    %c0_i32 = arith.constant 0 : i32
    %c0_i32_0 = arith.constant 0 : i32
    return %arg0, %c0_i32 : i32, i32
  }
}

</mosaic_0001>

<bundles_post_ra>
// kernel: _lambda_.1
= control target key start
LH: loop header
LB: loop body
LE: loop exit
PB: predicated region body
PF: predicated region fallthrough
CT: control target
= control target key end

     0   :  { %v153_v36 = vlaneseq  ;;  %v1637_v37 = vmov 1966171168   ;;  %s2137_s0 = inlined_call_operand.vmem [shape: bf16[2,1024], index: 0, kind: input, shape index: {}]   ;;  %s2138_s1 = inlined_call_operand.vmem [shape: bf16[1024,256], index: 1, kind: input, shape index: {}]   ;;  %s2139_s2 = inlined_call_operand.vmem [shape: f32[1,256], index: 2, kind: input, shape index: {}]   ;;  %s2140_s3 = inlined_call_operand.vmem [shape: bf16[256,128], index: 3, kind: input, shape index: {}]   ;;  %s2141_s4 = inlined_call_operand.vmem [shape: f32[1,128], index: 4, kind: input, shape index: {}]   ;;  %s2142_s5 = inlined_call_operand.hbm [shape: f32[2,128], index: 5, kind: output, shape index: {}]  }
   0x1   :  { %v1404_v0 = vld [vmem:[%s2138_s1 + $0x4] ss:$8 sps:$4 sm:$0xff]   ;;  %v1408_v2 = vld [vmem:[%s2138_s1] ss:$8 sps:$4 sm:$0xff]   ;;  %v1410_v4 = vld [vmem:[%s2138_s1 + $0x14] ss:$8 sps:$4 sm:$0xff]   ;;  %v166_v38 = vunpack.c.l.s4 %v1637_v37 }
   0x2   :  { %v1406_v1 = vld [vmem:[%s2138_s1 + $0x204] ss:$8 sps:$4 sm:$0xff]   ;;  %861 = vmatprep.subr.bf16.mxu1 %v1404_v0  ;;  %v1409_v3 = vld [vmem:[%s2138_s1 + $0x200] ss:$8 sps:$4 sm:$0xff]   ;;  %v1412_v5 = vld [vmem:[%s2138_s1 + $0x214] ss:$8 sps:$4 sm:$0xff]  }
   0x3   :  { %943 = vmatprep.subr.bf16.mxu0 %v1406_v1  ;;  %862 = vmatpush1.bf16.msra.mxu1 %v1408_v2  ;;  %v1414_v6 = vld [vmem:[%s2138_s1 + $0x10] ss:$8 sps:$4 sm:$0xff]   ;;  %v1416_v8 = vld [vmem:[%s2138_s1 + $0x24] ss:$8 sps:$4 sm:$0xff]   ;;  %v1420_v10 = vld [vmem:[%s2138_s1 + $0x20] ss:$8 sps:$4 sm:$0xff]   ;;  %v167_v43 = vunpack.c.0.s8 %v166_v38 }
   0x4   :  { %944 = vmatpush1.bf16.msra.mxu0 %v1409_v3  ;;  %863 = vmatprep.subr.bf16.mxu1 %v1410_v4  ;;  %v1415_v7 = vld [vmem:[%s2138_s1 + $0x210] ss:$8 sps:$4 sm:$0xff]   ;;  %v1418_v9 = vld [vmem:[%s2138_s1 + $0x224] ss:$8 sps:$4 sm:$0xff]   ;;  %v1421_v11 = vld [vmem:[%s2138_s1 + $0x220] ss:$8 sps:$4 sm:$0xff]  }
   0x5   :  { %945 = vmatprep.subr.bf16.mxu0 %v1412_v5  ;;  %v1422_v12 = vld [vmem:[%s2138_s1 + $0x34] ss:$8 sps:$4 sm:$0xff]   ;;  %v1426_v14 = vld [vmem:[%s2138_s1 + $0x30] ss:$8 sps:$4 sm:$0xff]   ;;  %v1428_v16 = vld [vmem:[%s2138_s1 + $0x44] ss:$8 sps:$4 sm:$0xff]  }
   0x6   :  { %v1424_v13 = vld [vmem:[%s2138_s1 + $0x234] ss:$8 sps:$4 sm:$0xff]   ;;  %v1427_v15 = vld [vmem:[%s2138_s1 + $0x230] ss:$8 sps:$4 sm:$0xff]   ;;  %v1430_v17 = vld [vmem:[%s2138_s1 + $0x244] ss:$8 sps:$4 sm:$0xff]  }
   0x7   :  { %864 = vmatpush1.bf16.msra.mxu1 %v1414_v6  ;;  %v1432_v18 = vld [vmem:[%s2138_s1 + $0x40] ss:$8 sps:$4 sm:$0xff]   ;;  %v1434_v20 = vld [vmem:[%s2138_s1 + $0x54] ss:$8 sps:$4 sm:$0xff]   ;;  %v1438_v22 = vld [vmem:[%s2138_s1 + $0x50] ss:$8 sps:$4 sm:$0xff]  }
   0x8   :  { %946 = vmatpush1.bf16.msra.mxu0 %v1415_v7  ;;  %865 = vmatprep.subr.bf16.mxu1 %v1416_v8  ;;  %v1433_v19 = vld [vmem:[%s2138_s1 + $0x240] ss:$8 sps:$4 sm:$0xff]   ;;  %v1436_v21 = vld [vmem:[%s2138_s1 + $0x254] ss:$8 sps:$4 sm:$0xff]   ;;  %v1439_v23 = vld [vmem:[%s2138_s1 + $0x250] ss:$8 sps:$4 sm:$0xff]  }
   0x9   :  { %947 = vmatprep.subr.bf16.mxu0 %v1418_v9  ;;  %v1440_v24 = vld [vmem:[%s2138_s1 + $0x64] ss:$8 sps:$4 sm:$0xff]   ;;  %v1444_v26 = vld [vmem:[%s2138_s1 + $0x60] ss:$8 sps:$4 sm:$0xff]   ;;  %v1446_v28 = vld [vmem:[%s2138_s1 + $0x74] ss:$8 sps:$4 sm:$0xff]  }
   0xa   :  { %v1442_v25 = vld [vmem:[%s2138_s1 + $0x264] ss:$8 sps:$4 sm:$0xff]   ;;  %v1445_v27 = vld [vmem:[%s2138_s1 + $0x260] ss:$8 sps:$4 sm:$0xff]   ;;  %v1448_v29 = vld [vmem:[%s2138_s1 + $0x274] ss:$8 sps:$4 sm:$0xff]  }
   0xb   :  { %866 = vmatpush1.bf16.msra.mxu1 %v1420_v10  ;;  %v1450_v30 = vld [vmem:[%s2138_s1 + $0x70] ss:$8 sps:$4 sm:$0xff]   ;;  %v1452_v32 = vld [vmem:[%s2138_s1 + $0x84] ss:$8 sps:$4 sm:$0xff]   ;;  %v1456_v34 = vld [vmem:[%s2138_s1 + $0x80] ss:$8 sps:$4 sm:$0xff]  }
   0xc   :  { %948 = vmatpush1.bf16.msra.mxu0 %v1421_v11  ;;  %867 = vmatprep.subr.bf16.mxu1 %v1422_v12  ;;  %v1451_v31 = vld [vmem:[%s2138_s1 + $0x270] ss:$8 sps:$4 sm:$0xff]   ;;  %v1454_v33 = vld [vmem:[%s2138_s1 + $0x284] ss:$8 sps:$4 sm:$0xff]   ;;  %v1457_v35 = vld [vmem:[%s2138_s1 + $0x280] ss:$8 sps:$4 sm:$0xff]  }
   0xd   :  { %949 = vmatprep.subr.bf16.mxu0 %v1424_v13  ;;  %v1458_v39 = vld [vmem:[%s2138_s1 + $0x94] ss:$8 sps:$4 sm:$0xff]   ;;  %v1462_v41 = vld [vmem:[%s2138_s1 + $0x90] ss:$8 sps:$4 sm:$0xff]   ;;  %v1786_v42 = vshrl.u32 %v153_v36, 7  ;;  %v22_v52 = vld [vmem:[%s2137_s0] sm:$0xff] }
   0xe   :  { %v1460_v40 = vld [vmem:[%s2138_s1 + $0x294] ss:$8 sps:$4 sm:$0xff]   ;;  %v1463_v44 = vld [vmem:[%s2138_s1 + $0x290] ss:$8 sps:$4 sm:$0xff]   ;;  %v1464_v45 = vld [vmem:[%s2138_s1 + $0xa4] ss:$8 sps:$4 sm:$0xff]   ;;  %v164_v55 = vcombine.high %v22_v52, %v22_v52 }
   0xf   :  { %868 = vmatpush1.bf16.msra.mxu1 %v1426_v14  ;;  %v1466_v46 = vld [vmem:[%s2138_s1 + $0x2a4] ss:$8 sps:$4 sm:$0xff]   ;;  %v1468_v47 = vld [vmem:[%s2138_s1 + $0xa0] ss:$8 sps:$4 sm:$0xff]   ;;  %v170_v49 = vsub.s32 %v167_v43, %v1786_v42  ;;  %v1470_v50 = vld [vmem:[%s2138_s1 + $0xb4] ss:$8 sps:$4 sm:$0xff]  }
  0x10   :  { %950 = vmatpush1.bf16.msra.mxu0 %v1427_v15  ;;  %869 = vmatprep.subr.bf16.mxu1 %v1428_v16  ;;  %v1469_v48 = vld [vmem:[%s2138_s1 + $0x2a0] ss:$8 sps:$4 sm:$0xff]   ;;  %v1472_v51 = vld [vmem:[%s2138_s1 + $0x2b4] ss:$8 sps:$4 sm:$0xff]   ;;  %v1474_v53 = vld [vmem:[%s2138_s1 + $0xb0] ss:$8 sps:$4 sm:$0xff]  }
  0x11   :  { %951 = vmatprep.subr.bf16.mxu0 %v1430_v17  ;;  %v171_v54 = vrot.slane %v22_v52, %v170_v49  ;;  %v1475_v56 = vld [vmem:[%s2138_s1 + $0x2b0] ss:$8 sps:$4 sm:$0xff]   ;;  %v1476_v57 = vld [vmem:[%s2138_s1 + $0xc4] ss:$8 sps:$4 sm:$0xff]   ;;  %v178_v60 = vrot.slane %v164_v55, %v170_v49  ;;  %v1480_v61 = vld [vmem:[%s2138_s1 + $0xc0] ss:$8 sps:$4 sm:$0xff]  }
  0x12   :  { %v1478_v58 = vld [vmem:[%s2138_s1 + $0x2c4] ss:$8 sps:$4 sm:$0xff]   ;;  %v1481_v0 = vld [vmem:[%s2138_s1 + $0x2c0] ss:$8 sps:$4 sm:$0xff]   ;;  %v1482_v1 = vld [vmem:[%s2138_s1 + $0xd4] ss:$8 sps:$4 sm:$0xff]  }
  0x13   :  { %870 = vmatpush1.bf16.msra.mxu1 %v1432_v18  ;;  %v179_v59 = vcombine.high %v171_v54, %v171_v54  ;;  %v180_v63 = vcombine.high %v178_v60, %v178_v60  ;;  %v1484_v2 = vld [vmem:[%s2138_s1 + $0x2d4] ss:$8 sps:$4 sm:$0xff]   ;;  %v1486_v4 = vld [vmem:[%s2138_s1 + $0xd0] ss:$8 sps:$4 sm:$0xff]   ;;  %v1488_v6 = vld [vmem:[%s2138_s1 + $0xe4] ss:$8 sps:$4 sm:$0xff]   ;;  %v1876_v17 = vrot.slane %v171_v54, %v170_v49  ;;  %v1878_v18 = vrot.slane %v178_v60, %v170_v49 }
  0x14   :  { %952 = vmatpush1.bf16.msra.mxu0 %v1433_v19  ;;  %871 = vmatprep.subr.bf16.mxu1 %v1434_v20  ;;  %v1487_v5 = vld [vmem:[%s2138_s1 + $0x2d0] ss:$8 sps:$4 sm:$0xff]   ;;  %v1490_v7 = vld [vmem:[%s2138_s1 + $0x2e4] ss:$8 sps:$4 sm:$0xff]   ;;  %v1492_v8 = vld [vmem:[%s2138_s1 + $0xe0] ss:$8 sps:$4 sm:$0xff]  }
  0x15   :  { %953 = vmatprep.subr.bf16.mxu0 %v1436_v21  ;;  %v201_v62 = vrot.slane %v179_v59, %v170_v49  ;;  %v208_v3 = vrot.slane %v180_v63, %v170_v49  ;;  %v1493_v9 = vld [vmem:[%s2138_s1 + $0x2e0] ss:$8 sps:$4 sm:$0xff]   ;;  %v1494_v10 = vld [vmem:[%s2138_s1 + $0xf4] ss:$8 sps:$4 sm:$0xff]   ;;  %v1498_v12 = vld [vmem:[%s2138_s1 + $0xf0] ss:$8 sps:$4 sm:$0xff]  }
  0x16   :  { %v1496_v11 = vld [vmem:[%s2138_s1 + $0x2f4] ss:$8 sps:$4 sm:$0xff]   ;;  %v1499_v13 = vld [vmem:[%s2138_s1 + $0x2f0] ss:$8 sps:$4 sm:$0xff]   ;;  %v1502_v14 = vld [vmem:[%s2138_s1 + $0x104] ss:$8 sps:$4 sm:$0xff]  }
  0x17   :  { %872 = vmatpush1.bf16.msra.mxu1 %v1438_v22  ;;  %893 = vmatprep.mubr.bf16.mxu1 %v201_v62  ;;  %v1506_v15 = vld [vmem:[%s2138_s1 + $0x304] ss:$8 sps:$4 sm:$0xff]   ;;  %v1500_v16 = vld [vmem:[%s2138_s1 + $0x100] ss:$8 sps:$4 sm:$0xff]   ;;  %v1509_v20 = vld [vmem:[%s2138_s1 + $0x114] ss:$8 sps:$4 sm:$0xff]   ;;  %v211_v22 = vcombine.high %v201_v62, %v201_v62 }
  0x18   :  { %954 = vmatpush1.bf16.msra.mxu0 %v1439_v23  ;;  %873 = vmatprep.subr.bf16.mxu1 %v1440_v24  ;;  %v1504_v19 = vld [vmem:[%s2138_s1 + $0x300] ss:$8 sps:$4 sm:$0xff]   ;;  %v1512_v21 = vld [vmem:[%s2138_s1 + $0x314] ss:$8 sps:$4 sm:$0xff]   ;;  %v212_v23 = vcombine.high %v208_v3, %v208_v3  ;;  %v1507_v24 = vld [vmem:[%s2138_s1 + $0x110] ss:$8 sps:$4 sm:$0xff]  }
  0x19   :  { %955 = vmatprep.subr.bf16.mxu0 %v1442_v25  ;;  %975 = vmatprep.mubr.bf16.mxu0 %v208_v3  ;;  %v1510_v25 = vld [vmem:[%s2138_s1 + $0x310] ss:$8 sps:$4 sm:$0xff]   ;;  %v1525_v36 = vld [vmem:[%s2138_s1 + $0x140] ss:$8 sps:$4 sm:$0xff]   ;;  %v1533_v38 = vld [vmem:[%s2138_s1 + $0x154] ss:$8 sps:$4 sm:$0xff]  }
  0x1a   :  { %v1528_v37 = vld [vmem:[%s2138_s1 + $0x340] ss:$8 sps:$4 sm:$0xff]   ;;  %v1539_v43 = vld [vmem:[%s2138_s1 + $0x164] ss:$8 sps:$4 sm:$0xff]   ;;  %v1543_v49 = vld [vmem:[%s2138_s1 + $0x170] ss:$8 sps:$4 sm:$0xff]  }
  0x1b   :  { %874 = vmatpush1.bf16.msra.mxu1 %v1444_v26  ;;  %v1515_v26 = vld [vmem:[%s2138_s1 + $0x124] ss:$8 sps:$4 sm:$0xff]   ;;  %v1552_v54 = vld [vmem:[%s2138_s1 + $0x380] ss:$8 sps:$4 sm:$0xff]   ;;  %v1557_v55 = vld [vmem:[%s2138_s1 + $0x194] ss:$8 sps:$4 sm:$0xff]  }
  0x1c   :  { %956 = vmatpush1.bf16.msra.mxu0 %v1445_v27  ;;  %875 = vmatprep.subr.bf16.mxu1 %v1446_v28  ;;  %v1518_v27 = vld [vmem:[%s2138_s1 + $0x324] ss:$8 sps:$4 sm:$0xff]   ;;  %v1513_v28 = vld [vmem:[%s2138_s1 + $0x120] ss:$8 sps:$4 sm:$0xff]  }
  0x1d   :  { %957 = vmatprep.subr.bf16.mxu0 %v1448_v29  ;;  %v1516_v29 = vld [vmem:[%s2138_s1 + $0x320] ss:$8 sps:$4 sm:$0xff]   ;;  %v1554_v52 = vld [vmem:[%s2138_s1 + $0x384] ss:$8 sps:$4 sm:$0xff]  }
  0x1f   :  { %876 = vmatpush1.bf16.msra.mxu1 %v1450_v30  ;;  %v1521_v30 = vld [vmem:[%s2138_s1 + $0x134] ss:$8 sps:$4 sm:$0xff]  }
  0x20   :  { %958 = vmatpush1.bf16.msra.mxu0 %v1451_v31  ;;  %877 = vmatprep.subr.bf16.mxu1 %v1452_v32  ;;  %v1524_v31 = vld [vmem:[%s2138_s1 + $0x334] ss:$8 sps:$4 sm:$0xff]   ;;  %v1519_v32 = vld [vmem:[%s2138_s1 + $0x130] ss:$8 sps:$4 sm:$0xff]  }
  0x21   :  { %959 = vmatprep.subr.bf16.mxu0 %v1454_v33  ;;  %v1522_v33 = vld [vmem:[%s2138_s1 + $0x330] ss:$8 sps:$4 sm:$0xff]  }
  0x23   :  { %878 = vmatpush1.bf16.msra.mxu1 %v1456_v34  ;;  %v1527_v34 = vld [vmem:[%s2138_s1 + $0x144] ss:$8 sps:$4 sm:$0xff]  }
  0x24   :  { %960 = vmatpush1.bf16.msra.mxu0 %v1457_v35  ;;  %879 = vmatprep.subr.bf16.mxu1 %v1458_v39  ;;  %v1530_v35 = vld [vmem:[%s2138_s1 + $0x344] ss:$8 sps:$4 sm:$0xff]   ;;  %v1536_v39 = vld [vmem:[%s2138_s1 + $0x354] ss:$8 sps:$4 sm:$0xff]  }
  0x25   :  { %961 = vmatprep.subr.bf16.mxu0 %v1460_v40  ;;  %v1531_v40 = vld [vmem:[%s2138_s1 + $0x150] ss:$8 sps:$4 sm:$0xff]  }
  0x27   :  { %880 = vmatpush1.bf16.msra.mxu1 %v1462_v41  ;;  %v1534_v41 = vld [vmem:[%s2138_s1 + $0x350] ss:$8 sps:$4 sm:$0xff]  }
  0x28   :  { %962 = vmatpush1.bf16.msra.mxu0 %v1463_v44  ;;  %881 = vmatprep.subr.bf16.mxu1 %v1464_v45  ;;  %v1542_v44 = vld [vmem:[%s2138_s1 + $0x364] ss:$8 sps:$4 sm:$0xff]   ;;  %v1537_v45 = vld [vmem:[%s2138_s1 + $0x160] ss:$8 sps:$4 sm:$0xff]  }
  0x29   :  { %963 = vmatprep.subr.bf16.mxu0 %v1466_v46  ;;  %v1540_v46 = vld [vmem:[%s2138_s1 + $0x360] ss:$8 sps:$4 sm:$0xff]  }
  0x2b   :  { %882 = vmatpush1.bf16.msra.mxu1 %v1468_v47  ;;  %v1545_v47 = vld [vmem:[%s2138_s1 + $0x174] ss:$8 sps:$4 sm:$0xff]  }
  0x2c   :  { %964 = vmatpush1.bf16.msra.mxu0 %v1469_v48  ;;  %883 = vmatprep.subr.bf16.mxu1 %v1470_v50  ;;  %v1548_v48 = vld [vmem:[%s2138_s1 + $0x374] ss:$8 sps:$4 sm:$0xff]   ;;  %v1546_v50 = vld [vmem:[%s2138_s1 + $0x370] ss:$8 sps:$4 sm:$0xff]  }
  0x2d   :  { %965 = vmatprep.subr.bf16.mxu0 %v1472_v51  ;;  %v1551_v51 = vld [vmem:[%s2138_s1 + $0x184] ss:$8 sps:$4 sm:$0xff]  }
  0x2f   :  { %884 = vmatpush1.bf16.msra.mxu1 %v1474_v53  ;;  %v1549_v53 = vld [vmem:[%s2138_s1 + $0x180] ss:$8 sps:$4 sm:$0xff]  }
  0x30   :  { %966 = vmatpush1.bf16.msra.mxu0 %v1475_v56  ;;  %885 = vmatprep.subr.bf16.mxu1 %v1476_v57  ;;  %v1560_v56 = vld [vmem:[%s2138_s1 + $0x394] ss:$8 sps:$4 sm:$0xff]   ;;  %v1555_v57 = vld [vmem:[%s2138_s1 + $0x190] ss:$8 sps:$4 sm:$0xff]  }
  0x31   :  { %967 = vmatprep.subr.bf16.mxu0 %v1478_v58  ;;  %v1558_v58 = vld [vmem:[%s2138_s1 + $0x390] ss:$8 sps:$4 sm:$0xff]  }
  0x33   :  { %886 = vmatpush1.bf16.msra.mxu1 %v1480_v61 }
  0x34   :  { %968 = vmatpush1.bf16.msra.mxu0 %v1481_v0  ;;  %887 = vmatprep.subr.bf16.mxu1 %v1482_v1 }
  0x35   :  { %969 = vmatprep.subr.bf16.mxu0 %v1484_v2 }
  0x37   :  { %888 = vmatpush1.bf16.msra.mxu1 %v1486_v4 }
  0x38   :  { %970 = vmatpush1.bf16.msra.mxu0 %v1487_v5  ;;  %889 = vmatprep.subr.bf16.mxu1 %v1488_v6 }
  0x39   :  { %971 = vmatprep.subr.bf16.mxu0 %v1490_v7 }
  0x3b   :  { %890 = vmatpush1.bf16.msra.mxu1 %v1492_v8 }
  0x3c   :  { %972 = vmatpush1.bf16.msra.mxu0 %v1493_v9  ;;  %891 = vmatprep.subr.bf16.mxu1 %v1494_v10 }
  0x3d   :  { %973 = vmatprep.subr.bf16.mxu0 %v1496_v11 }
  0x3f   :  { %892 = vmatpush1.bf16.msra.mxu1 %v1498_v12 }
  0x40   :  { %974 = vmatpush1.bf16.msra.mxu0 %v1499_v13  ;;  %902 = vmatprep.subr.bf16.mxu1 %v1502_v14 }
  0x41   :  { %984 = vmatprep.subr.bf16.mxu0 %v1506_v15 }
  0x42   :  { %894 = vmatmul.mubr.bf16.vlgmr.msra.gmra.mrb[0].mxu1 %v1876_v17 }
  0x43   :  { %976 = vmatmul.mubr.bf16.vlgmr.msra.gmra.mrb[0].mxu0 %v1878_v18  ;;  %903 = vmatpush1.bf16.msra.mxu1 %v1500_v16 }
  0x44   :  { %985 = vmatpush1.bf16.msra.mxu0 %v1504_v19  ;;  %904 = vmatprep.subr.bf16.mxu1 %v1509_v20 }
  0x45   :  { %986 = vmatprep.subr.bf16.mxu0 %v1512_v21  ;;  %934 = vmatprep.mubr.bf16.mxu1 %v211_v22 }
  0x46   :  { %1016 = vmatprep.mubr.bf16.mxu0 %v212_v23 }
  0x47   :  { %905 = vmatpush1.bf16.msra.mxu1 %v1507_v24 }
  0x48   :  { %987 = vmatpush1.bf16.msra.mxu0 %v1510_v25  ;;  %906 = vmatprep.subr.bf16.mxu1 %v1515_v26 }
  0x49   :  { %988 = vmatprep.subr.bf16.mxu0 %v1518_v27 }
  0x4b   :  { %907 = vmatpush1.bf16.msra.mxu1 %v1513_v28 }
  0x4c   :  { %989 = vmatpush1.bf16.msra.mxu0 %v1516_v29  ;;  %908 = vmatprep.subr.bf16.mxu1 %v1521_v30 }
  0x4d   :  { %990 = vmatprep.subr.bf16.mxu0 %v1524_v31 }
  0x4f   :  { %909 = vmatpush1.bf16.msra.mxu1 %v1519_v32 }
  0x50   :  { %991 = vmatpush1.bf16.msra.mxu0 %v1522_v33  ;;  %910 = vmatprep.subr.bf16.mxu1 %v1527_v34 }
  0x51   :  { %992 = vmatprep.subr.bf16.mxu0 %v1530_v35 }
  0x53   :  { %911 = vmatpush1.bf16.msra.mxu1 %v1525_v36 }
  0x54   :  { %993 = vmatpush1.bf16.msra.mxu0 %v1528_v37  ;;  %912 = vmatprep.subr.bf16.mxu1 %v1533_v38 }
  0x55   :  { %994 = vmatprep.subr.bf16.mxu0 %v1536_v39 }
  0x57   :  { %913 = vmatpush1.bf16.msra.mxu1 %v1531_v40 }
  0x58   :  { %995 = vmatpush1.bf16.msra.mxu0 %v1534_v41  ;;  %914 = vmatprep.subr.bf16.mxu1 %v1539_v43 }
  0x59   :  { %996 = vmatprep.subr.bf16.mxu0 %v1542_v44 }
  0x5b   :  { %915 = vmatpush1.bf16.msra.mxu1 %v1537_v45 }
  0x5c   :  { %997 = vmatpush1.bf16.msra.mxu0 %v1540_v46  ;;  %916 = vmatprep.subr.bf16.mxu1 %v1545_v47 }
  0x5d   :  { %998 = vmatprep.subr.bf16.mxu0 %v1548_v48 }
  0x5f   :  { %917 = vmatpush1.bf16.msra.mxu1 %v1543_v49 }
  0x60   :  { %999 = vmatpush1.bf16.msra.mxu0 %v1546_v50  ;;  %918 = vmatprep.subr.bf16.mxu1 %v1551_v51 }
  0x61   :  { %1000 = vmatprep.subr.bf16.mxu0 %v1554_v52 }
  0x63   :  { %919 = vmatpush1.bf16.msra.mxu1 %v1549_v53 }
  0x64   :  { %1001 = vmatpush1.bf16.msra.mxu0 %v1552_v54 }
  0x65   :  { %10 = vsyncpa [#allocation3], 0  ;;  %920 = vmatprep.subr.bf16.mxu1 %v1557_v55  ;;  %1002 = vmatprep.subr.bf16.mxu0 %v1560_v56  ;;  %v1563_v59 = vld [vmem:[%s2138_s1 + $0x1a4] ss:$8 sps:$4 sm:$0xff]   ;;  %v1561_v61 = vld [vmem:[%s2138_s1 + $0x1a0] ss:$8 sps:$4 sm:$0xff]   ;;  %v209_v22 = vcombine.high %v1876_v17, %v1876_v17  ;;  %v210_v23 = vcombine.high %v1878_v18, %v1878_v18 }
  0x66   :  { %v1566_v60 = vld [vmem:[%s2138_s1 + $0x3a4] ss:$8 sps:$4 sm:$0xff]   ;;  %v1564_v62 = vld [vmem:[%s2138_s1 + $0x3a0] ss:$8 sps:$4 sm:$0xff]   ;;  %v1569_v63 = vld [vmem:[%s2138_s1 + $0x1b4] ss:$8 sps:$4 sm:$0xff]  }
  0x67   :  { %921 = vmatpush1.bf16.msra.mxu1 %v1555_v57  ;;  %v1572_v0 = vld [vmem:[%s2138_s1 + $0x3b4] ss:$8 sps:$4 sm:$0xff]   ;;  %v1567_v1 = vld [vmem:[%s2138_s1 + $0x1b0] ss:$8 sps:$4 sm:$0xff]   ;;  %v1575_v3 = vld [vmem:[%s2138_s1 + $0x1c4] ss:$8 sps:$4 sm:$0xff]  }
  0x68   :  { %1003 = vmatpush1.bf16.msra.mxu0 %v1558_v58  ;;  %922 = vmatprep.subr.bf16.mxu1 %v1563_v59  ;;  %v1570_v2 = vld [vmem:[%s2138_s1 + $0x3b0] ss:$8 sps:$4 sm:$0xff]   ;;  %v1578_v4 = vld [vmem:[%s2138_s1 + $0x3c4] ss:$8 sps:$4 sm:$0xff]   ;;  %v1573_v5 = vld [vmem:[%s2138_s1 + $0x1c0] ss:$8 sps:$4 sm:$0xff]  }
  0x69   :  { %1004 = vmatprep.subr.bf16.mxu0 %v1566_v60  ;;  %v1576_v6 = vld [vmem:[%s2138_s1 + $0x3c0] ss:$8 sps:$4 sm:$0xff]   ;;  %v1581_v7 = vld [vmem:[%s2138_s1 + $0x1d4] ss:$8 sps:$4 sm:$0xff]   ;;  %v1579_v9 = vld [vmem:[%s2138_s1 + $0x1d0] ss:$8 sps:$4 sm:$0xff]  }
  0x6a   :  { %v1584_v8 = vld [vmem:[%s2138_s1 + $0x3d4] ss:$8 sps:$4 sm:$0xff]   ;;  %v1582_v10 = vld [vmem:[%s2138_s1 + $0x3d0] ss:$8 sps:$4 sm:$0xff]   ;;  %v1587_v11 = vld [vmem:[%s2138_s1 + $0x1e4] ss:$8 sps:$4 sm:$0xff]  }
  0x6b   :  { %923 = vmatpush1.bf16.msra.mxu1 %v1561_v61  ;;  %v1590_v12 = vld [vmem:[%s2138_s1 + $0x3e4] ss:$8 sps:$4 sm:$0xff]   ;;  %v1585_v13 = vld [vmem:[%s2138_s1 + $0x1e0] ss:$8 sps:$4 sm:$0xff]   ;;  %v1593_v15 = vld [vmem:[%s2138_s1 + $0x1f4] ss:$8 sps:$4 sm:$0xff]  }
  0x6c   :  { %1005 = vmatpush1.bf16.msra.mxu0 %v1564_v62  ;;  %924 = vmatprep.subr.bf16.mxu1 %v1569_v63  ;;  %v1588_v14 = vld [vmem:[%s2138_s1 + $0x3e0] ss:$8 sps:$4 sm:$0xff]   ;;  %v1596_v16 = vld [vmem:[%s2138_s1 + $0x3f4] ss:$8 sps:$4 sm:$0xff]   ;;  %v1591_v19 = vld [vmem:[%s2138_s1 + $0x1f0] ss:$8 sps:$4 sm:$0xff]  }
  0x6d   :  { %1006 = vmatprep.subr.bf16.mxu0 %v1572_v0  ;;  %v1594_v20 = vld [vmem:[%s2138_s1 + $0x3f0] ss:$8 sps:$4 sm:$0xff]   ;;  %v1597_v21 = vld [vmem:[%s2140_s3 + $0x40] sm:$0xff]   ;;  %v1599_v25 = vld [vmem:[%s2140_s3 + $0x48] sm:$0xff]   ;;  %v155_v37 = vsub.s32 0, %v1786_v42  ;;  %v159_v39 = vsub.s32 1, %v1786_v42 }
  0x6e   :  { %v1598_v24 = vld [vmem:[%s2140_s3] sm:$0xff]   ;;  %v1600_v17 = vld [vmem:[%s2140_s3 + $0x8] sm:$0xff]   ;;  %v1601_v18 = vld [vmem:[%s2140_s3 + $0x50] sm:$0xff]   ;;  %s1638_s25 = smov [#allocation2]  }
  0x6f   :  { %925 = vmatpush1.bf16.msra.mxu1 %v1567_v1  ;;  %v1602_v26 = vld [vmem:[%s2140_s3 + $0x10] sm:$0xff]   ;;  %v1603_v27 = vld [vmem:[%s2140_s3 + $0x58] sm:$0xff]   ;;  %v1605_v29 = vld [vmem:[%s2140_s3 + $0x60] sm:$0xff]   ;;  %s1215_s26 = sshll.u32 %s1638_s25, 4  ;;  %s1216_s26 = int_to_ptr.vmem [resolvable:$true] %s1215_s26 }
  0x70   :  { %1007 = vmatpush1.bf16.msra.mxu0 %v1570_v2  ;;  %926 = vmatprep.subr.bf16.mxu1 %v1575_v3  ;;  %v1604_v28 = vld [vmem:[%s2140_s3 + $0x18] sm:$0xff]   ;;  %v1606_v30 = vld [vmem:[%s2140_s3 + $0x20] sm:$0xff]   ;;  %v1607_v31 = vld [vmem:[%s2140_s3 + $0x68] sm:$0xff]   ;;  %s1613_s27 = scalar_lea.vmem %s1216_s26, 32  ;;  %p1618_p1 = scmp.lt.s32.totalorder %s1216_s26, %s1216_s26 }
  0x71   :  { %1008 = vmatprep.subr.bf16.mxu0 %v1578_v4  ;;  %v1608_v32 = vld [vmem:[%s2140_s3 + $0x28] sm:$0xff]   ;;  %v1609_v33 = vld [vmem:[%s2140_s3 + $0x70] sm:$0xff]   ;;  %v1611_v35 = vld [vmem:[%s2140_s3 + $0x78] sm:$0xff]   ;;  %p1614_p0 = scmp.ne.s32.totalorder %s1216_s26, %s1613_s27  ;;  %p1619_p2 = scmp.lt.s32.totalorder %s1613_s27, %s1613_s27 }
  0x72   :  { %v1610_v34 = vld [vmem:[%s2140_s3 + $0x30] sm:$0xff]   ;;  %v1612_v36 = vld [vmem:[%s2140_s3 + $0x38] sm:$0xff]   ;;  %v151_v38 = vld [vmem:[%s2139_s2] sm:$0x3] }
  0x73   :  { %927 = vmatpush1.bf16.msra.mxu1 %v1573_v5  ;;  %v156_v40 = vrot.slane %v151_v38, %v155_v37  ;;  %v160_v41 = vrot.slane %v151_v38, %v159_v39  ;;  %v1351_v61 = vld [vmem:[%s2141_s4] ss:$0 sm:$0xff]  ;;  %p1620_p3 = por %p1619_p2, %p1618_p1 }
  0x74   :  { %1009 = vmatpush1.bf16.msra.mxu0 %v1576_v6  ;;  %928 = vmatprep.subr.bf16.mxu1 %v1581_v7 }
  0x75   :  { %1010 = vmatprep.subr.bf16.mxu0 %v1584_v8  ;;  %p1621_p4 = pnand %p1620_p3, %p1614_p0 }
  0x77   :  { %929 = vmatpush1.bf16.msra.mxu1 %v1579_v9 }
  0x78   :  { %1011 = vmatpush1.bf16.msra.mxu0 %v1582_v10  ;;  %930 = vmatprep.subr.bf16.mxu1 %v1587_v11 }
  0x79   :  { %1012 = vmatprep.subr.bf16.mxu0 %v1590_v12 }
  0x7b   :  { %931 = vmatpush1.bf16.msra.mxu1 %v1585_v13 }
  0x7c   :  { %1013 = vmatpush1.bf16.msra.mxu0 %v1588_v14  ;;  %932 = vmatprep.subr.bf16.mxu1 %v1593_v15 }
  0x7d   :  { %1014 = vmatprep.subr.bf16.mxu0 %v1596_v16 }
  0x7f   :  { %933 = vmatpush1.bf16.msra.mxu1 %v1591_v19 }
  0x80   :  { %1015 = vmatpush1.bf16.msra.mxu0 %v1594_v20  ;;  %1368 = vmatprep.subr.bf16.mxu1 %v1597_v21 }
  0x82   :  { %935 = vmatmul.mubr.bf16.vlgmr.msra.gmra.mrb[0].mxu1 %v209_v22 }
  0x83   :  { %1017 = vmatmul.mubr.bf16.vlgmr.msra.gmra.mrb[0].mxu0 %v210_v23  ;;  %1369 = vmatpush3.bf16.msra.mxu1 %v1598_v24 }
  0x84   :  { %1370 = vmatprep.subr.bf16.mxu1 %v1599_v25 }
  0x87   :  { %1371 = vmatpush3.bf16.msra.mxu1 %v1600_v17 }
  0x88   :  { %1372 = vmatprep.subr.bf16.mxu1 %v1601_v18 }
  0x8b   :  { %1373 = vmatpush3.bf16.msra.mxu1 %v1602_v26 }
  0x8c   :  { %1374 = vmatprep.subr.bf16.mxu1 %v1603_v27 }
  0x8f   :  { %1375 = vmatpush3.bf16.msra.mxu1 %v1604_v28 }
  0x90   :  { %1376 = vmatprep.subr.bf16.mxu1 %v1605_v29 }
  0x93   :  { %1377 = vmatpush3.bf16.msra.mxu1 %v1606_v30 }
  0x94   :  { %1378 = vmatprep.subr.bf16.mxu1 %v1607_v31 }
  0x97   :  { %1379 = vmatpush3.bf16.msra.mxu1 %v1608_v32 }
  0x98   :  { %1380 = vmatprep.subr.bf16.mxu1 %v1609_v33 }
  0x9b   :  { %1381 = vmatpush3.bf16.msra.mxu1 %v1610_v34 }
  0x9c   :  { %1382 = vmatprep.subr.bf16.mxu1 %v1611_v35 }
  0x9f   :  { %1383 = vmatpush3.bf16.msra.mxu1 %v1612_v36 }
 0x155   :  { %v936_v43 = vpop.f32.mrb[0].mxu1 }
 0x156   :  { %v1018_v44 = vpop.f32.mrb[0].mxu0  ;;  %v1390_v45 = vadd.f32 %v936_v43, %v156_v40  ;;  %v938_v46 = vpop.f32.mrb[1].mxu1 }
 0x157   :  { %v1020_v47 = vpop.f32.mrb[1].mxu0  ;;  %v1392_v48 = vadd.f32 %v938_v46, %v160_v41  ;;  %v940_v49 = vpop.f32.mrb[2].mxu1 }
 0x158   :  { %v1022_v50 = vpop.f32.mrb[2].mxu0  ;;  %v1391_v51 = vadd.f32 %v1390_v45, %v1018_v44  ;;  %v941_v52 = vpop.f32.mrb[3].mxu1 }
 0x159   :  { %v1023_v53 = vpop.f32.mrb[3].mxu0  ;;  %v1393_v54 = vadd.f32 %v1392_v48, %v1020_v47 }
 0x15a   :  { %v1025_v55 = vmul.f32 0.01, %v1391_v51 }
 0x15b   :  { %v1026_v56 = vmul.f32 0.01, %v1393_v54 }
 0x15c   :  { %v1027_v57 = vmax.f32 %v1391_v51, %v1025_v55 }
 0x15d   :  { %v1028_v58 = vmax.f32 %v1393_v54, %v1026_v56 }
 0x15e   :  { %v1029_v42 = vpack.c.bf16 %v1027_v57, %v1027_v57 }
 0x15f   :  { %v1030_v59 = vpack.c.bf16 %v1028_v58, %v1028_v58 }
 0x161   :  { %1198 = vmatprep.mubr.bf16.mxu1 %v1030_v59 }
 0x162   :  { %1199 = vmatmul.mubr.bf16.vlgmr.msra.gmra.mrb[4].mxu1 %v1029_v42 }
 0x235   :  { %v1384_v60 = vpop.f32.mrb[4].mxu1 }
 0x236   :  { %v1385_v62 = vpop.f32.mrb[5].mxu1 }
 0x237   :  { %v1386_v63 = vadd.f32 %v1385_v62, %v1384_v60  ;;  %v1387_v0 = vpop.f32.mrb[6].mxu1 }
 0x238   :  { %v1388_v1 = vpop.f32.mrb[7].mxu1 }
 0x239   :  { %v1201_v2 = vadd.f32 %v1386_v63, %v1351_v61 }
 0x23b   :  { %v1206_v3 = vmul.f32 0.01, %v1201_v2 }
 0x23d   :  { %v1207_v4 = vmax.f32 %v1201_v2, %v1206_v3 }
 0x23f   :  { %1208 = vst [vmem:[#allocation2] sm:$0x3] %v1207_v4 }
 0x240   :  { %1624 = shalt.err (!%p1621_p4)
}
 0x241   :  { %s1625_s29 = scalar_lea.hbm %s2142_s5, 32 }
 0x242   :  { %p1626_p5 = scmp.ne.s32.totalorder %s2142_s5, %s1625_s29  ;;  %p1629_p6 = scmp.lt.u32.totalorder %s1625_s29, %s2142_s5 }
 0x244   :  { %p1631_p7 = pnand %p1629_p6, %p1626_p5 }
 0x246   :  { %1634 = shalt.err (!%p1631_p7)
}
 0x247   :  { %1218 = dma.vmem_to_hbm [thread:$0]  %s1216_s26, 32, %s2142_s5, [#allocation3]  }
 0x248   :  { %1635 = dma.done.wait [#allocation3], 32  }
 0x249   :  { %1636 = vsyncadd [#allocation3], 4294967264 }
 0x24a   :  { %1222 = vsyncpa [#allocation3], 1 }

</bundles_post_ra>
